<compile_context>
chip_gen: v6e
topology: v6e:2x2x1
jax: 0.10.0
libtpu: 0.0.40
codegen_flags: <defaults>
</compile_context>

<pallas_src>
import jax
import jax.numpy as jnp
from jax.experimental import pallas as pl
from jax.experimental.pallas import tpu as pltpu


H1 = 128       # fc1 width
H2 = 64        # fc2 true width
LANES = 128    # lane-dense padded width for fc2 / fc3 intermediates
NUM_CLASSES = 2
NEG_BIG = -1e30


def _round_up(x, m):
    return (x + m - 1) // m * m


def _mlp_kernel(x_ref, w1_ref, b1_ref, w2_ref, b2_ref, w3_ref, b3_ref, o_ref):
    """One batch tile of the fused MLP. Weights are VMEM-resident across tiles."""
    # Cast to bf16 in-kernel (free VPU work; avoids an extra HBM pass over x).
    x = x_ref[...].astype(jnp.bfloat16)            # (TILE_B, input_dim)

    # fc1 + ReLU  (dropout1 = identity in eval mode)
    h1 = jnp.dot(x, w1_ref[...], preferred_element_type=jnp.float32) + b1_ref[...]
    h1 = jnp.maximum(h1, 0.0)

    # fc2 (padded to 128 lanes with zero weights/bias -> exact) + ReLU
    # (dropout2 = identity in eval mode)
    h2 = jnp.dot(h1.astype(jnp.bfloat16), w2_ref[...],
                 preferred_element_type=jnp.float32) + b2_ref[...]
    h2 = jnp.maximum(h2, 0.0)

    # fc3 (padded to 128 lanes; padded columns carry bias -1e30 so they drop
    # out of the softmax below)
    logits = jnp.dot(h2.astype(jnp.bfloat16), w3_ref[...],
                     preferred_element_type=jnp.float32) + b3_ref[...]

    # Numerically stable log_softmax over the lane axis; the -1e30 padded
    # columns contribute exp(-inf)=0 to the denominator and never win the max.
    m = jnp.max(logits, axis=-1, keepdims=True)
    shifted = logits - m
    lse = jnp.log(jnp.sum(jnp.exp(shifted), axis=-1, keepdims=True))

    # Store only the 2 real class columns (narrow output: 8 B/row writeback).
    o_ref[...] = (shifted - lse)[:, :NUM_CLASSES]


def _prepare_params(params):
    """Transpose/pad/cast PyTorch-layout params into kernel layout.

    Weights are [in_features, out_features]; matmul operands in bf16, biases f32.
    fc2/fc3 are zero-padded to 128 output lanes (exact: ReLU(0)=0, zero rows of
    w3 multiply the zero-padded h2 columns). Padded fc3 bias columns are -1e30.
    """
    w1, b1, w2, b2, w3, b3 = params

    w2p = jnp.zeros((H1, LANES), jnp.float32).at[:, :H2].set(w2)
    b2p = jnp.zeros((1, LANES), jnp.float32).at[:, :H2].set(b2)

    w3p = jnp.zeros((LANES, LANES), jnp.float32).at[:H2, :NUM_CLASSES].set(w3)
    b3p = jnp.full((1, LANES), NEG_BIG, jnp.float32).at[:, :NUM_CLASSES].set(b3)

    return (w1.astype(jnp.bfloat16), b1.astype(jnp.float32),
            w2p.astype(jnp.bfloat16), b2p.astype(jnp.float32),
            w3p.astype(jnp.bfloat16), b3p.astype(jnp.float32))


def dnn_forward(x, params, *, tile_b_max=1024):
    """Run the fused MLP kernel. x: [B, input_dim] float32. Returns [B, 2] f32."""
    B, input_dim = x.shape
    w1, b1, w2p, b2p, w3p, b3p = _prepare_params(params)

    # Batch tile: multiple of 8 (f32 sublane), capped at tile_b_max, and sized
    # so the grid has >= 2 steps when B allows it (v7x has 2 TensorCores).
    half = _round_up(pl.cdiv(B, 2), 8)
    tile_b = max(8, min(tile_b_max, half))
    grid = (pl.cdiv(B, tile_b),)     # ragged final tile handled by Pallas masking

    weight_bytes = (input_dim * H1 + H1 * LANES + LANES * LANES) * 2 + 3 * LANES * 4
    cost = pl.CostEstimate(
        flops=2 * B * (input_dim * H1 + H1 * LANES + LANES * LANES),
        transcendentals=B * LANES,
        bytes_accessed=B * input_dim * 4 + weight_bytes + B * NUM_CLASSES * 4,
    )

    out = pl.pallas_call(
        _mlp_kernel,
        out_shape=jax.ShapeDtypeStruct((B, NUM_CLASSES), jnp.float32),
        grid=grid,
        in_specs=[
            pl.BlockSpec((tile_b, input_dim), lambda i: (i, 0)),   # x tile (f32)
            pl.BlockSpec((input_dim, H1), lambda i: (0, 0)),       # w1 (resident)
            pl.BlockSpec((1, H1), lambda i: (0, 0)),               # b1
            pl.BlockSpec((H1, LANES), lambda i: (0, 0)),           # w2 padded
            pl.BlockSpec((1, LANES), lambda i: (0, 0)),            # b2 padded
            pl.BlockSpec((LANES, LANES), lambda i: (0, 0)),        # w3 padded
            pl.BlockSpec((1, LANES), lambda i: (0, 0)),            # b3 padded
        ],
        out_specs=pl.BlockSpec((tile_b, NUM_CLASSES), lambda i: (i, 0)),
        compiler_params=pltpu.CompilerParams(
            dimension_semantics=("parallel",),
            vmem_limit_bytes=32 * 1024 * 1024,
        ),
        cost_estimate=cost,
    )(x, w1, b1, w2p, b2p, w3p, b3p)

    return out


def init_params(key, input_dim):
    """Deterministic init mimicking PyTorch nn.Linear (uniform +-1/sqrt(fan_in)).

    Weights stored as [in_features, out_features]; biases as [1, out_features].
    """
    dims = [(input_dim, H1), (H1, H2), (H2, NUM_CLASSES)]
    params = []
    for (fan_in, fan_out) in dims:
        key, kw, kb = jax.random.split(key, 3)
        bound = 1.0 / jnp.sqrt(jnp.float32(fan_in))
        w = jax.random.uniform(kw, (fan_in, fan_out), jnp.float32, -bound, bound)
        b = jax.random.uniform(kb, (1, fan_out), jnp.float32, -bound, bound)
        params += [w, b]
    return tuple(params)


def _reference_forward(x, params):
    """Pure-JAX reference with the same bf16 matmul / f32 accumulate path."""
    w1, b1, w2, b2, w3, b3 = params

    def mm(a, w):
        return jnp.dot(a.astype(jnp.bfloat16), w.astype(jnp.bfloat16),
                       preferred_element_type=jnp.float32)

    h1 = jnp.maximum(mm(x, w1) + b1, 0.0)
    h2 = jnp.maximum(mm(h1, w2) + b2, 0.0)
    logits = mm(h2, w3) + b3
    return jax.nn.log_softmax(logits, axis=-1)


if __name__ == "__main__":
    key = jax.random.PRNGKey(0)
    kx, kp = jax.random.split(key)

    batch, input_dim = 8, 16
    x = jax.random.normal(kx, (batch, input_dim), jnp.float32)
    params = init_params(kp, input_dim)

    out = dnn_forward(x, params)
    out = jax.block_until_ready(out)

    # sanity: log_softmax rows must sum to 1 in prob space
    probs_sum = jnp.sum(jnp.exp(out), axis=-1)
    assert out.shape == (batch, NUM_CLASSES)
    assert bool(jnp.all(jnp.abs(probs_sum - 1.0) < 1e-4))

    # sanity vs. pure-JAX reference on the same bf16/f32 path
    ref = _reference_forward(x, params)
    assert bool(jnp.all(jnp.abs(out - ref) < 1e-2))

    print("KERNEL_OK")
</pallas_src>

<mosaic_0001>
module attributes {stable_mosaic.version = 11 : i64} {
  func.func @_mlp_kernel(%arg0: i32, %arg1: memref<8x16xf32, #tpu.memory_space<vmem>>, %arg2: memref<16x128xbf16, #tpu.memory_space<vmem>>, %arg3: memref<1x128xf32, #tpu.memory_space<vmem>>, %arg4: memref<128x128xbf16, #tpu.memory_space<vmem>>, %arg5: memref<1x128xf32, #tpu.memory_space<vmem>>, %arg6: memref<128x128xbf16, #tpu.memory_space<vmem>>, %arg7: memref<1x128xf32, #tpu.memory_space<vmem>>, %arg8: memref<8x2xf32, #tpu.memory_space<vmem>>) attributes {dimension_semantics = [#tpu.dimension_semantics<parallel>], iteration_bounds = array<i64: 1>, scalar_prefetch = 0 : i64, scratch_operands = 0 : i64, tpu.core_type = #tpu.core_type<tc>, window_params = [{transform_indices = @transform_0, window_bounds = array<i64: 8, 16>}, {pipeline_mode = #tpu.pipeline_mode<synchronous>, transform_indices = @transform_1, window_bounds = array<i64: 16, 128>}, {pipeline_mode = #tpu.pipeline_mode<synchronous>, transform_indices = @transform_2, window_bounds = array<i64: 1, 128>}, {pipeline_mode = #tpu.pipeline_mode<synchronous>, transform_indices = @transform_3, window_bounds = array<i64: 128, 128>}, {pipeline_mode = #tpu.pipeline_mode<synchronous>, transform_indices = @transform_4, window_bounds = array<i64: 1, 128>}, {pipeline_mode = #tpu.pipeline_mode<synchronous>, transform_indices = @transform_5, window_bounds = array<i64: 128, 128>}, {pipeline_mode = #tpu.pipeline_mode<synchronous>, transform_indices = @transform_6, window_bounds = array<i64: 1, 128>}, {transform_indices = @transform_7, window_bounds = array<i64: 8, 2>}]} {
    %c0 = arith.constant 0 : index
    %c0_0 = arith.constant 0 : index
    %0 = vector.load %arg1[%c0, %c0_0] : memref<8x16xf32, #tpu.memory_space<vmem>>, vector<8x16xf32>
    %1 = arith.truncf %0 : vector<8x16xf32> to vector<8x16xbf16>
    %c0_1 = arith.constant 0 : index
    %c0_2 = arith.constant 0 : index
    %2 = vector.load %arg2[%c0_1, %c0_2] : memref<16x128xbf16, #tpu.memory_space<vmem>>, vector<16x128xbf16>
    %cst = arith.constant dense<0.000000e+00> : vector<8x128xf32>
    %3 = tpu.matmul %1, %2, %cst {dimension_numbers = #tpu.dot_dimension_numbers<[1], [0], [0], [1], [0, 0, 1, 1], [], []>} : vector<8x16xbf16>, vector<16x128xbf16>, vector<8x128xf32> -> vector<8x128xf32>
    %c0_3 = arith.constant 0 : index
    %c0_4 = arith.constant 0 : index
    %4 = vector.load %arg3[%c0_3, %c0_4] : memref<1x128xf32, #tpu.memory_space<vmem>>, vector<1x128xf32>
    %5 = vector.broadcast %4 : vector<1x128xf32> to vector<8x128xf32>
    %6 = arith.addf %3, %5 : vector<8x128xf32>
    %cst_5 = arith.constant 0.000000e+00 : f32
    %7 = vector.broadcast %cst_5 : f32 to vector<8x128xf32>
    %8 = arith.maximumf %6, %7 : vector<8x128xf32>
    %9 = arith.truncf %8 : vector<8x128xf32> to vector<8x128xbf16>
    %c0_6 = arith.constant 0 : index
    %c0_7 = arith.constant 0 : index
    %10 = vector.load %arg4[%c0_6, %c0_7] : memref<128x128xbf16, #tpu.memory_space<vmem>>, vector<128x128xbf16>
    %cst_8 = arith.constant dense<0.000000e+00> : vector<8x128xf32>
    %11 = tpu.matmul %9, %10, %cst_8 {dimension_numbers = #tpu.dot_dimension_numbers<[1], [0], [0], [1], [0, 0, 1, 1], [], []>} : vector<8x128xbf16>, vector<128x128xbf16>, vector<8x128xf32> -> vector<8x128xf32>
    %c0_9 = arith.constant 0 : index
    %c0_10 = arith.constant 0 : index
    %12 = vector.load %arg5[%c0_9, %c0_10] : memref<1x128xf32, #tpu.memory_space<vmem>>, vector<1x128xf32>
    %13 = vector.broadcast %12 : vector<1x128xf32> to vector<8x128xf32>
    %14 = arith.addf %11, %13 : vector<8x128xf32>
    %cst_11 = arith.constant 0.000000e+00 : f32
    %15 = vector.broadcast %cst_11 : f32 to vector<8x128xf32>
    %16 = arith.maximumf %14, %15 : vector<8x128xf32>
    %17 = arith.truncf %16 : vector<8x128xf32> to vector<8x128xbf16>
    %c0_12 = arith.constant 0 : index
    %c0_13 = arith.constant 0 : index
    %18 = vector.load %arg6[%c0_12, %c0_13] : memref<128x128xbf16, #tpu.memory_space<vmem>>, vector<128x128xbf16>
    %cst_14 = arith.constant dense<0.000000e+00> : vector<8x128xf32>
    %19 = tpu.matmul %17, %18, %cst_14 {dimension_numbers = #tpu.dot_dimension_numbers<[1], [0], [0], [1], [0, 0, 1, 1], [], []>} : vector<8x128xbf16>, vector<128x128xbf16>, vector<8x128xf32> -> vector<8x128xf32>
    %c0_15 = arith.constant 0 : index
    %c0_16 = arith.constant 0 : index
    %20 = vector.load %arg7[%c0_15, %c0_16] : memref<1x128xf32, #tpu.memory_space<vmem>>, vector<1x128xf32>
    %21 = vector.broadcast %20 : vector<1x128xf32> to vector<8x128xf32>
    %22 = arith.addf %19, %21 : vector<8x128xf32>
    %cst_17 = arith.constant dense<0xFF800000> : vector<8xf32>
    %23 = vector.multi_reduction <maximumf>, %22, %cst_17 [1] : vector<8x128xf32> to vector<8xf32>
    %24 = vector.shape_cast %23 : vector<8xf32> to vector<8x1xf32>
    %25 = vector.broadcast %24 : vector<8x1xf32> to vector<8x128xf32>
    %26 = arith.subf %22, %25 : vector<8x128xf32>
    %27 = math.exp %26 : vector<8x128xf32>
    %cst_18 = arith.constant dense<0.000000e+00> : vector<8xf32>
    %28 = vector.multi_reduction <add>, %27, %cst_18 [1] : vector<8x128xf32> to vector<8xf32>
    %29 = vector.shape_cast %28 : vector<8xf32> to vector<8x1xf32>
    %30 = math.log %29 : vector<8x1xf32>
    %31 = vector.broadcast %30 : vector<8x1xf32> to vector<8x128xf32>
    %32 = arith.subf %26, %31 : vector<8x128xf32>
    %33 = vector.extract_strided_slice %32 {offsets = [0, 0], sizes = [8, 2], strides = [1, 1]} : vector<8x128xf32> to vector<8x2xf32>
    %c0_19 = arith.constant 0 : index
    %c0_20 = arith.constant 0 : index
    %34 = vector.load %arg8[%c0_19, %c0_20] : memref<8x2xf32, #tpu.memory_space<vmem>>, vector<8x2xf32>
    tpu.vector_store %arg8[%c0_19, %c0_20], %33 {strides = array<i32>} : memref<8x2xf32, #tpu.memory_space<vmem>>, vector<8x2xf32>,
    return
  }
  func.func @transform_0(%arg0: i32) -> (i32, i32) {
    %c0_i32 = arith.constant 0 : i32
    %c0_i32_0 = arith.constant 0 : i32
    return %arg0, %c0_i32 : i32, i32
  }
  func.func @transform_1(%arg0: i32) -> (i32, i32) {
    %c0_i32 = arith.constant 0 : i32
    %c0_i32_0 = arith.constant 0 : i32
    %c0_i32_1 = arith.constant 0 : i32
    return %c0_i32, %c0_i32_0 : i32, i32
  }
  func.func @transform_2(%arg0: i32) -> (i32, i32) {
    %c0_i32 = arith.constant 0 : i32
    %c0_i32_0 = arith.constant 0 : i32
    %c0_i32_1 = arith.constant 0 : i32
    return %c0_i32, %c0_i32_0 : i32, i32
  }
  func.func @transform_3(%arg0: i32) -> (i32, i32) {
    %c0_i32 = arith.constant 0 : i32
    %c0_i32_0 = arith.constant 0 : i32
    %c0_i32_1 = arith.constant 0 : i32
    return %c0_i32, %c0_i32_0 : i32, i32
  }
  func.func @transform_4(%arg0: i32) -> (i32, i32) {
    %c0_i32 = arith.constant 0 : i32
    %c0_i32_0 = arith.constant 0 : i32
    %c0_i32_1 = arith.constant 0 : i32
    return %c0_i32, %c0_i32_0 : i32, i32
  }
  func.func @transform_5(%arg0: i32) -> (i32, i32) {
    %c0_i32 = arith.constant 0 : i32
    %c0_i32_0 = arith.constant 0 : i32
    %c0_i32_1 = arith.constant 0 : i32
    return %c0_i32, %c0_i32_0 : i32, i32
  }
  func.func @transform_6(%arg0: i32) -> (i32, i32) {
    %c0_i32 = arith.constant 0 : i32
    %c0_i32_0 = arith.constant 0 : i32
    %c0_i32_1 = arith.constant 0 : i32
    return %c0_i32, %c0_i32_0 : i32, i32
  }
  func.func @transform_7(%arg0: i32) -> (i32, i32) {
    %c0_i32 = arith.constant 0 : i32
    %c0_i32_0 = arith.constant 0 : i32
    return %arg0, %c0_i32 : i32, i32
  }
}

</mosaic_0001>

<bundles_post_ra>
// kernel: tpu_custom_call.1
= control target key start
LH: loop header
LB: loop body
LE: loop exit
PB: predicated region body
PF: predicated region fallthrough
CT: control target
= control target key end

     0   :  { %12 = vsyncpa [#allocation3], 0  ;;  %s689_s0 = inlined_call_operand.hbm [shape: f32[8,16], index: 0, kind: input, shape index: {}]   ;;  %s690_s1 = inlined_call_operand.hbm [shape: bf16[16,128], index: 1, kind: input, shape index: {}]   ;;  %s691_s2 = inlined_call_operand.vmem [shape: f32[1,128], index: 2, kind: input, shape index: {}]   ;;  %s692_s3 = inlined_call_operand.hbm [shape: bf16[128,128], index: 3, kind: input, shape index: {}]   ;;  %s693_s4 = inlined_call_operand.vmem [shape: f32[1,128], index: 4, kind: input, shape index: {}]   ;;  %s694_s5 = inlined_call_operand.hbm [shape: bf16[128,128], index: 5, kind: input, shape index: {}]   ;;  %s695_s6 = inlined_call_operand.vmem [shape: f32[1,128], index: 6, kind: input, shape index: {}]   ;;  %s696_s7 = inlined_call_operand.vmem [shape: f32[8,2], index: 7, kind: output, shape index: {}]  }
   0x1   :  { %13 = vsyncpa [#allocation5], 0 }
   0x2   :  { %14 = vsyncpa [#allocation8], 0  ;;  %s588_s24 = smov [#allocation4]  }
   0x3   :  { %s30_s25 = sshll.u32 %s588_s24, 4  ;;  %s31_s25 = int_to_ptr.vmem [resolvable:$true] %s30_s25 }
   0x4   :  { %s510_s26 = scalar_lea.vmem %s31_s25, 128  ;;  %p515_p1 = scmp.lt.s32.totalorder %s31_s25, %s31_s25 }
   0x5   :  { %p511_p0 = scmp.ne.s32.totalorder %s31_s25, %s510_s26  ;;  %p516_p2 = scmp.lt.s32.totalorder %s510_s26, %s510_s26 }
   0x7   :  { %p517_p3 = por %p516_p2, %p515_p1 }
   0x9   :  { %p518_p4 = pnand %p517_p3, %p511_p0 }
   0xb   :  { %521 = shalt.err (!%p518_p4)
}
   0xc   :  { %s589_s27 = smov 64   ;;  %s590_s28 = smov 4  }
   0xd   :  { %36 = dma.hbm_to_vmem [thread:$0]  %s690_s1, 128, %s31_s25, [#allocation5], %s589_s27, %s589_s27, %s590_s28  }
   0xe   :  { %s591_s8 = smov [#allocation2]   ;;  %s592_s10 = smov [#allocation6]  }
   0xf   :  { %s21_s9 = sshll.u32 %s591_s8, 4  ;;  %s44_s11 = sshll.u32 %s592_s10, 4  ;;  %s22_s9 = int_to_ptr.vmem [resolvable:$true] %s21_s9  ;;  %s45_s11 = int_to_ptr.vmem [resolvable:$true] %s44_s11 }
  0x10   :  { %s530_s12 = scalar_lea.vmem %s22_s9, 128  ;;  %p535_p6 = scmp.lt.s32.totalorder %s22_s9, %s22_s9 }
  0x11   :  { %p531_p5 = scmp.ne.s32.totalorder %s22_s9, %s530_s12  ;;  %p536_p7 = scmp.lt.s32.totalorder %s530_s12, %s530_s12 }
  0x13   :  { %p537_p8 = por %p536_p7, %p535_p6 }
  0x15   :  { %p538_p9 = pnand %p537_p8, %p531_p5 }
  0x17   :  { %541 = shalt.err (!%p538_p9)
}
  0x18   :  { %24 = dma.hbm_to_vmem [thread:$0]  %s689_s0, 128, %s22_s9, [#allocation3]  }
  0x19   :  { %s550_s15 = scalar_lea.vmem %s45_s11, 1024  ;;  %p555_p11 = scmp.lt.s32.totalorder %s45_s11, %s45_s11 }
  0x1a   :  { %p551_p10 = scmp.ne.s32.totalorder %s45_s11, %s550_s15  ;;  %p556_p12 = scmp.lt.s32.totalorder %s550_s15, %s550_s15 }
  0x1c   :  { %p557_p13 = por %p556_p12, %p555_p11 }
  0x1e   :  { %p558_p0 = pnand %p557_p13, %p551_p10 }
  0x20   :  { %561 = shalt.err (!%p558_p0)
}
  0x21   :  { %50 = dma.hbm_to_vmem [thread:$0]  %s692_s3, 1024, %s45_s11, [#allocation5], %s589_s27, %s589_s27, %s590_s28  }
  0x22   :  { %s593_s17 = smov [#allocation7]  }
  0x23   :  { %s58_s18 = sshll.u32 %s593_s17, 4  ;;  %s59_s18 = int_to_ptr.vmem [resolvable:$true] %s58_s18 }
  0x24   :  { %s570_s19 = scalar_lea.vmem %s59_s18, 1024  ;;  %p575_p2 = scmp.lt.s32.totalorder %s59_s18, %s59_s18 }
  0x25   :  { %p571_p1 = scmp.ne.s32.totalorder %s59_s18, %s570_s19  ;;  %p576_p3 = scmp.lt.s32.totalorder %s570_s19, %s570_s19 }
  0x27   :  { %p577_p4 = por %p576_p3, %p575_p2 }
  0x29   :  { %p578_p5 = pnand %p577_p4, %p571_p1 }
  0x2b   :  { %581 = shalt.err (!%p578_p5)
}
  0x2c   :  { %64 = dma.hbm_to_vmem [thread:$0]  %s694_s5, 1024, %s59_s18, [#allocation8], %s589_s27, %s589_s27, %s590_s28  }
  0x2d   :  { %582 = dma.done.wait [#allocation3], 128  }
  0x2e   :  { %583 = vsyncadd [#allocation3], 4294967168 }
  0x2f   :  { %584 = dma.done.wait [#allocation5], 1152  }
  0x30   :  { %585 = vsyncadd [#allocation5], 4294966144 }
  0x31   :  { %586 = dma.done.wait [#allocation8], 1024  }
  0x32   :  { %587 = vsyncadd [#allocation8], 4294966272  ;;  %v594_v0 = vmov 0.0   ;;  %vm595_vm0 = vmmov 0   ;;  %v481_v1 = vld [vmem:[#allocation4] sm:$0xff]   ;;  %v80_v2 = vld [vmem:[#allocation2] sm:$0xff] }
  0x33   :  { %427 = vmatprep.subr.bf16.mxu0 %v594_v0  ;;  %429 = vmatprep.mubr.msk.bf16.mxu0 %vm595_vm0, %v594_v0  ;;  %v81_v3 = vpack.c.bf16 %v80_v2, %v80_v2  ;;  %vm97_vm1 = vcmask 130048   ;;  %v482_v4 = vld [vmem:[#allocation6 + $0x38] sm:$0xff]   ;;  %v483_v5 = vld [vmem:[#allocation6 + $0x30] sm:$0xff]   ;;  %v484_v6 = vld [vmem:[#allocation6 + $0x28] sm:$0xff]   ;;  %vm377_vm2 = vcmask 15360  }
  0x34   :  { %433 = vmatprep.subr.bf16.mxu1 %v594_v0  ;;  %449 = vmatprep.mubr.msk.bf16.mxu1 %vm595_vm0, %v594_v0  ;;  %v485_v7 = vld [vmem:[#allocation6 + $0x20] sm:$0xff]   ;;  %v486_v8 = vld [vmem:[#allocation6 + $0x18] sm:$0xff]   ;;  %v487_v9 = vld [vmem:[#allocation6 + $0x10] sm:$0xff]  }
  0x35   :  { %428 = vmatpush3.bf16.msra.mxu0 %v481_v1  ;;  %434 = vmatpush3.bf16.msra.mxu1 %v482_v4  ;;  %v488_v10 = vld [vmem:[#allocation6 + $0x8] sm:$0xff]   ;;  %v489_v11 = vld [vmem:[#allocation6] sm:$0xff]   ;;  %v490_v12 = vld [vmem:[#allocation7 + $0x38] sm:$0xff]  }
  0x36   :  { %453 = vmatprep.subr.bf16.mxu0 %v594_v0  ;;  %435 = vmatprep.subr.bf16.mxu1 %v594_v0  ;;  %v491_v13 = vld [vmem:[#allocation7 + $0x30] sm:$0xff]   ;;  %v492_v14 = vld [vmem:[#allocation7 + $0x28] sm:$0xff]   ;;  %v493_v15 = vld [vmem:[#allocation7 + $0x20] sm:$0xff]  }
  0x37   :  { %v494_v16 = vld [vmem:[#allocation7 + $0x18] sm:$0xff]   ;;  %v495_v17 = vld [vmem:[#allocation7 + $0x10] sm:$0xff]   ;;  %v496_v26 = vld [vmem:[#allocation7 + $0x8] sm:$0xff]  }
  0x38   :  { %430 = vmatmul.mubr.msk.bf16.vlgmr.msra.gmra.mxu0 %vm97_vm1, %v81_v3  ;;  %v386_v18 = vld [vmem:[%s691_s2] ss:$0 sm:$0xff]  ;;  %v497_v27 = vld [vmem:[#allocation7] sm:$0xff]  }
  0x39   :  { %469 = vmatprep.mubr.msk.bf16.mxu0 %vm595_vm0, %v594_v0  ;;  %436 = vmatpush3.bf16.msra.mxu1 %v483_v5  ;;  %v389_v28 = vld [vmem:[%s693_s4] ss:$0 sm:$0xff] }
  0x3a   :  { %437 = vmatprep.subr.bf16.mxu1 %v594_v0  ;;  %454 = vmatpush3.bf16.msra.mxu0 %v490_v12  ;;  %v398_v36 = vld [vmem:[%s695_s6] ss:$0 sm:$0xff] }
  0x3b   :  { %455 = vmatprep.subr.bf16.mxu0 %v594_v0 }
  0x3d   :  { %438 = vmatpush3.bf16.msra.mxu1 %v484_v6 }
  0x3e   :  { %439 = vmatprep.subr.bf16.mxu1 %v594_v0  ;;  %456 = vmatpush3.bf16.msra.mxu0 %v491_v13 }
  0x3f   :  { %457 = vmatprep.subr.bf16.mxu0 %v594_v0 }
  0x41   :  { %440 = vmatpush3.bf16.msra.mxu1 %v485_v7 }
  0x42   :  { %441 = vmatprep.subr.bf16.mxu1 %v594_v0  ;;  %458 = vmatpush3.bf16.msra.mxu0 %v492_v14 }
  0x43   :  { %459 = vmatprep.subr.bf16.mxu0 %v594_v0 }
  0x45   :  { %442 = vmatpush3.bf16.msra.mxu1 %v486_v8 }
  0x46   :  { %443 = vmatprep.subr.bf16.mxu1 %v594_v0  ;;  %460 = vmatpush3.bf16.msra.mxu0 %v493_v15 }
  0x47   :  { %461 = vmatprep.subr.bf16.mxu0 %v594_v0 }
  0x49   :  { %444 = vmatpush3.bf16.msra.mxu1 %v487_v9 }
  0x4a   :  { %445 = vmatprep.subr.bf16.mxu1 %v594_v0  ;;  %462 = vmatpush3.bf16.msra.mxu0 %v494_v16 }
  0x4b   :  { %463 = vmatprep.subr.bf16.mxu0 %v594_v0 }
  0x4d   :  { %446 = vmatpush3.bf16.msra.mxu1 %v488_v10 }
  0x4e   :  { %447 = vmatprep.subr.bf16.mxu1 %v594_v0  ;;  %464 = vmatpush3.bf16.msra.mxu0 %v495_v17 }
  0x4f   :  { %465 = vmatprep.subr.bf16.mxu0 %v594_v0 }
  0x51   :  { %448 = vmatpush3.bf16.msra.mxu1 %v489_v11 }
  0x52   :  { %466 = vmatpush3.bf16.msra.mxu0 %v496_v26 }
  0x53   :  { %467 = vmatprep.subr.bf16.mxu0 %v594_v0 }
  0x56   :  { %468 = vmatpush3.bf16.msra.mxu0 %v497_v27 }
  0xf8   :  { %v135_v19 = vpop.f32.mrf.mxu0 }
  0xf9   :  { %v136_v20 = vadd.f32 %v386_v18, %v135_v19 }
  0xfa   :  { %v431_v21 = vpop.f32.mrf.mxu0 }
  0xfb   :  { %v141_v22 = vmax.f32 %v136_v20, 0.0 }
  0xfc   :  { %v138_v23 = vpop.f32.mrf.mxu0 }
  0xfd   :  { %v142_v24 = vpack.c.bf16 %v141_v22, %v141_v22 }
  0xfe   :  { %v432_v25 = vpop.f32.mrf.mxu0 }
  0xff   :  { %450 = vmatmul.mubr.bf16.vlgmr.msra.gmra.mxu1 %v142_v24 }
 0x1bf   :  { %v248_v29 = vpop.f32.mrf.mxu1 }
 0x1c0   :  { %v249_v30 = vadd.f32 %v389_v28, %v248_v29 }
 0x1c1   :  { %v451_v31 = vpop.f32.mrf.mxu1 }
 0x1c2   :  { %v254_v32 = vmax.f32 %v249_v30, 0.0 }
 0x1c3   :  { %v251_v33 = vpop.f32.mrf.mxu1 }
 0x1c4   :  { %v255_v34 = vpack.c.bf16 %v254_v32, %v254_v32 }
 0x1c5   :  { %v452_v35 = vpop.f32.mrf.mxu1 }
 0x1c6   :  { %470 = vmatmul.mubr.bf16.vlgmr.msra.gmra.mxu0 %v255_v34 }
 0x286   :  { %v361_v37 = vpop.f32.mrf.mxu0 }
 0x287   :  { %v362_v38 = vadd.f32 %v398_v36, %v361_v37 }
 0x288   :  { %v471_v39 = vpop.f32.mrf.mxu0 }
 0x289   :  { %367 = vmax.xlane.f32.xlu0 %v362_v38 }
 0x28a   :  { %v364_v40 = vpop.f32.mrf.mxu0 }
 0x28c   :  { %v472_v41 = vpop.f32.mrf.mxu0 }
 0x312   :  { %v368_v42 = vpop.xlane.xlu0 %367 }
 0x313   :  { %v369_v43 = vsub.f32 %v362_v38, %v368_v42 }
 0x315   :  { %v370_v44 = vmul.f32 1.442695, %v369_v43 }
 0x317   :  { %498 = vpow2.f32 %v370_v44 }
 0x324   :  { %v499_v45 = vpop.eup %498 }
 0x325   :  { %372 = vadd.xlane.f32.xlu0 %v499_v45 }
 0x3ae   :  { %v373_v46 = vpop.xlane.xlu0 %372 }
 0x3af   :  { %500 = vlog2.f32 %v373_v46 }
 0x3bc   :  { %v501_v47 = vpop.eup %500 }
 0x3bd   :  { %v375_v48 = vmul.f32 0.6931472, %v501_v47 }
 0x3bf   :  { %v376_v49 = vsub.f32 %v369_v43, %v375_v48 }
 0x3c1   :  { %378 = vst.msk [vmem:[%s696_s7] sm:$0xff] %vm377_vm2, %v376_v49 }
 0x3c2   :  { %383 = vsyncpa [#allocation3], 1 }
 0x3c3   :  { %384 = vsyncpa [#allocation5], 1 }
 0x3c4   :  { %385 = vsyncpa [#allocation8], 1 }

</bundles_post_ra>
